<compile_context>
chip_gen: v7x
topology: tpu7x:2x2x1
jax: 0.10.0
libtpu: 0.0.40
codegen_flags: <defaults>
</compile_context>

<pallas_src>
import functools

import jax
import jax.numpy as jnp
from jax.experimental import pallas as pl
from jax.experimental.pallas import tpu as pltpu


# ----------------------------------------------------------------------------
# Pallas kernel: one MXU matmul per (ROI, channel-tile) grid step.
# ----------------------------------------------------------------------------
def _roi_align3d_kernel(bidx_ref, b_ref, x_ref, o_ref):
    # bidx_ref: scalar-prefetch ref, only consumed by the x index_map.
    # b_ref: (1, out_h*out_w, H*W) fused interpolation weights of this ROI.
    # x_ref: (1, H*W, ct_tile)     feature slab of the ROI's image.
    # o_ref: (1, out_h*out_w, ct_tile) lane-dense pooled output.
    o_ref[0] = jnp.dot(
        b_ref[0], x_ref[0], preferred_element_type=jnp.float32
    ).astype(o_ref.dtype)


# ----------------------------------------------------------------------------
# ROIAlign sampling-weight construction (Caffe2 / Detectron semantics).
# ----------------------------------------------------------------------------
def _axis_weights(start, bin_size, pooled, grid, size):
    """Per-ROI 1-D interpolation matrix of shape (K, pooled, size)."""
    dtype = start.dtype
    ph = jnp.arange(pooled, dtype=dtype)                 # (P,)
    iy = jnp.arange(grid, dtype=dtype)                   # (G,)
    # sample coordinate y[k, p, g]
    y = (start[:, None, None]
         + ph[None, :, None] * bin_size[:, None, None]
         + (iy[None, None, :] + 0.5) * bin_size[:, None, None] / grid)
    valid = (y >= -1.0) & (y <= size)                    # outside -> contributes 0
    y = jnp.maximum(y, 0.0)
    y_low = jnp.floor(y).astype(jnp.int32)
    at_end = y_low >= size - 1
    y_low = jnp.where(at_end, size - 1, y_low)
    y_high = jnp.where(at_end, size - 1, y_low + 1)
    y_val = jnp.where(at_end, y_low.astype(dtype), y)
    ly = y_val - y_low.astype(dtype)
    hy = 1.0 - ly
    oh_low = jax.nn.one_hot(y_low, size, dtype=dtype)    # (K, P, G, size)
    oh_high = jax.nn.one_hot(y_high, size, dtype=dtype)
    w = hy[..., None] * oh_low + ly[..., None] * oh_high
    w = w * valid[..., None].astype(dtype)
    return w.sum(axis=2) / grid                          # average over grid samples


def _roi_matrices(bbox, scale, out_h, out_w, sampling_ratio, H, W):
    x1 = bbox[:, 0] * scale
    y1 = bbox[:, 1] * scale
    x2 = bbox[:, 2] * scale
    y2 = bbox[:, 3] * scale
    roi_w = jnp.maximum(x2 - x1, 1.0)
    roi_h = jnp.maximum(y2 - y1, 1.0)
    Ay = _axis_weights(y1, roi_h / out_h, out_h, sampling_ratio, H)  # (K, out_h, H)
    Ax = _axis_weights(x1, roi_w / out_w, out_w, sampling_ratio, W)  # (K, out_w, W)
    return Ay, Ax


def _convert_to_roi_format(boxes, dtype):
    """boxes: list (per image) of (Ni, 4) arrays [x1, y1, x2, y2]."""
    bbox_list, id_list = [], []
    for i, b in enumerate(boxes):
        b = jnp.asarray(b, dtype)
        if b.shape[0] == 0:
            continue
        bbox_list.append(b.reshape(-1, 4))
        id_list.append(jnp.full((b.shape[0],), i, dtype=jnp.int32))
    if not bbox_list:                                    # no ROI at all
        return jnp.zeros((0,), jnp.int32), jnp.zeros((0, 4), dtype)
    return jnp.concatenate(id_list, axis=0), jnp.concatenate(bbox_list, axis=0)


def _pick_ct_tile(ct, hw, pq, in_itemsize, out_itemsize, budget_bytes=24 << 20):
    """Largest channel tile whose double-buffered blocks fit the VMEM budget.

    Tile must be a multiple of 128 (lane constraint) or the full C*T.
    """
    def step_bytes(tc):
        x_blk = hw * tc * in_itemsize
        b_blk = pq * hw * in_itemsize
        o_blk = pq * tc * out_itemsize
        return 2 * (x_blk + b_blk + o_blk)               # double-buffered

    if ct % 128 != 0 or step_bytes(ct) <= budget_bytes:
        return ct
    best = 128
    tc = 128
    while tc <= ct:
        if ct % tc == 0 and step_bytes(tc) <= budget_bytes:
            best = tc
        tc += 128
    return best


# ----------------------------------------------------------------------------
# Pooler3d forward.
# ----------------------------------------------------------------------------
def pooler3d_forward(x, boxes, *, output_size, scale, sampling_ratio,
                     compute_dtype=None):
    if isinstance(output_size, (tuple, list)):
        out_h, out_w = int(output_size[0]), int(output_size[1])
    else:
        out_h = out_w = int(output_size)
    if sampling_ratio is None or int(sampling_ratio) < 1:
        raise ValueError("pooler3d_forward requires sampling_ratio >= 1 "
                         "(adaptive grid not supported).")

    N, C, T, H, W = x.shape
    out_dtype = x.dtype

    batch_idx, bbox = _convert_to_roi_format(boxes, jnp.float32)
    K = int(batch_idx.shape[0])
    if K == 0:                                           # no ROIs -> empty output
        return jnp.zeros((0, C, T, out_h, out_w), out_dtype)

    # Sort ROIs by image index so consecutive grid steps reuse the resident
    # feature-map block (Pallas skips the DMA when the block index repeats).
    order = jnp.argsort(batch_idx, stable=True)
    inv_order = jnp.argsort(order, stable=True)
    batch_idx_s = batch_idx[order]
    bbox_s = bbox[order]

    # Weights built in f32, fused into a single per-ROI matrix.
    Ay, Ax = _roi_matrices(bbox_s, scale, out_h, out_w, sampling_ratio, H, W)
    PQ, HW, CT = out_h * out_w, H * W, C * T
    B = jnp.einsum("kph,kqw->kpqhw", Ay, Ax).reshape(K, PQ, HW)

    # Lane-dense feature layout: (N, H*W, C*T) with C*T on lanes.
    x_l = jnp.transpose(x, (0, 3, 4, 1, 2)).reshape(N, HW, CT)

    cdt = jnp.dtype(compute_dtype) if compute_dtype is not None else jnp.dtype(out_dtype)
    x_l = x_l.astype(cdt)
    B = B.astype(cdt)

    tc = _pick_ct_tile(CT, HW, PQ, cdt.itemsize, jnp.dtype(out_dtype).itemsize)
    n_ct = CT // tc

    grid_spec = pltpu.PrefetchScalarGridSpec(
        num_scalar_prefetch=1,
        # ROI axis is innermost so same-image ROIs keep the x block resident.
        grid=(n_ct, K),
        in_specs=[
            pl.BlockSpec((1, PQ, HW), lambda c, r, bidx: (r, 0, 0)),
            pl.BlockSpec((1, HW, tc), lambda c, r, bidx: (bidx[r], 0, c)),
        ],
        out_specs=pl.BlockSpec((1, PQ, tc), lambda c, r, bidx: (r, 0, c)),
    )

    out_flat = pl.pallas_call(
        _roi_align3d_kernel,
        out_shape=jax.ShapeDtypeStruct((K, PQ, CT), out_dtype),
        grid_spec=grid_spec,
        compiler_params=pltpu.CompilerParams(
            dimension_semantics=("parallel", "parallel"),
            vmem_limit_bytes=32 * 1024 * 1024),
    )(batch_idx_s, B, x_l)

    # Undo the ROI sort, then layout plumbing back to (K, C, T, out_h, out_w).
    out = out_flat[inv_order]
    out = out.reshape(K, out_h, out_w, C, T).transpose(0, 3, 4, 1, 2)
    return out


# ----------------------------------------------------------------------------
# Pure-JAX reference (same ROIAlign weight semantics).
# ----------------------------------------------------------------------------
def pooler3d_reference(x, boxes, *, output_size, scale, sampling_ratio):
    if isinstance(output_size, (tuple, list)):
        out_h, out_w = int(output_size[0]), int(output_size[1])
    else:
        out_h = out_w = int(output_size)
    N, C, T, H, W = x.shape
    batch_idx, bbox = _convert_to_roi_format(boxes, jnp.float32)
    if batch_idx.shape[0] == 0:
        return jnp.zeros((0, C, T, out_h, out_w), x.dtype)
    Ay, Ax = _roi_matrices(bbox, scale, out_h, out_w, sampling_ratio, H, W)
    xg = x[batch_idx].astype(jnp.float32)
    ref = jnp.einsum("kph,kqw,kcthw->kctpq", Ay, Ax, xg,
                     precision=jax.lax.Precision.HIGHEST)
    return ref.astype(x.dtype)


# ----------------------------------------------------------------------------
# Demo / self-check.
# ----------------------------------------------------------------------------
if __name__ == "__main__":
    key = jax.random.PRNGKey(0)
    k_feat, k_box = jax.random.split(key)

    # Small shapes consistent with the forward pass: x is (N, C, T, H, W).
    N, C, T, H, W = 2, 4, 8, 16, 16
    output_size = (7, 7)
    scale = 0.25            # feature map is 1/4 of the 64x64 image
    sampling_ratio = 2

    x = jax.random.normal(k_feat, (N, C, T, H, W), dtype=jnp.float32)

    # Deterministic boxes in image coordinates (0..64): 2 boxes for image 0,
    # 1 box for image 1.  (Stands in for the BoxList objects of the module.)
    raw = jax.random.uniform(k_box, (3, 4), minval=6.0, maxval=58.0)
    boxes_all = jnp.stack([
        jnp.minimum(raw[:, 0], raw[:, 2]) - 3.0,
        jnp.minimum(raw[:, 1], raw[:, 3]) - 3.0,
        jnp.maximum(raw[:, 0], raw[:, 2]) + 3.0,
        jnp.maximum(raw[:, 1], raw[:, 3]) + 3.0,
    ], axis=1)
    boxes = [boxes_all[:2], boxes_all[2:]]

    ref = pooler3d_reference(x, boxes, output_size=output_size,
                             scale=scale, sampling_ratio=sampling_ratio)

    # f32 path (default).
    out = pooler3d_forward(x, boxes, output_size=output_size,
                           scale=scale, sampling_ratio=sampling_ratio)
    out = jax.block_until_ready(out)
    assert out.shape == (3, C, T, output_size[0], output_size[1]), out.shape
    assert jnp.allclose(out, ref, atol=1e-4, rtol=1e-4), \
        float(jnp.max(jnp.abs(out - ref)))

    # bf16 compute path (v6e/v7x optimization): looser tolerance vs f32 ref.
    out_bf16 = pooler3d_forward(x, boxes, output_size=output_size,
                                scale=scale, sampling_ratio=sampling_ratio,
                                compute_dtype=jnp.bfloat16)
    out_bf16 = jax.block_until_ready(out_bf16)
    assert out_bf16.shape == out.shape, out_bf16.shape
    assert jnp.allclose(out_bf16, ref, atol=5e-2, rtol=5e-2), \
        float(jnp.max(jnp.abs(out_bf16 - ref)))

    # Zero-ROI guard.
    out_empty = pooler3d_forward(x, [boxes_all[:0], boxes_all[:0]],
                                 output_size=output_size, scale=scale,
                                 sampling_ratio=sampling_ratio)
    assert out_empty.shape == (0, C, T, output_size[0], output_size[1])

    print("KERNEL_OK")
</pallas_src>

<mosaic_0001>
module attributes {stable_mosaic.version = 11 : i64} {
  func.func @_roi_align3d_kernel(%arg0: i32, %arg1: i32, %arg2: memref<3xi32, #tpu.memory_space<smem>>, %arg3: memref<1x49x256xf32, #tpu.memory_space<vmem>>, %arg4: memref<1x256x32xf32, #tpu.memory_space<vmem>>, %arg5: memref<1x49x32xf32, #tpu.memory_space<vmem>>) attributes {dimension_semantics = [#tpu.dimension_semantics<parallel>, #tpu.dimension_semantics<parallel>], iteration_bounds = array<i64: 1, 3>, scalar_prefetch = 1 : i64, scratch_operands = 0 : i64, tpu.core_type = #tpu.core_type<tc>, window_params = [{transform_indices = @transform_0, window_bounds = array<i64: 1, 49, 256>}, {transform_indices = @transform_1, window_bounds = array<i64: 1, 256, 32>}, {transform_indices = @transform_2, window_bounds = array<i64: 1, 49, 32>}]} {
    %c0 = arith.constant 0 : index
    %c0_0 = arith.constant 0 : index
    %c0_1 = arith.constant 0 : index
    %0 = vector.load %arg3[%c0, %c0_0, %c0_1] : memref<1x49x256xf32, #tpu.memory_space<vmem>>, vector<1x49x256xf32>
    %1 = vector.shape_cast %0 : vector<1x49x256xf32> to vector<49x256xf32>
    %c0_2 = arith.constant 0 : index
    %c0_3 = arith.constant 0 : index
    %c0_4 = arith.constant 0 : index
    %2 = vector.load %arg4[%c0_2, %c0_3, %c0_4] : memref<1x256x32xf32, #tpu.memory_space<vmem>>, vector<1x256x32xf32>
    %3 = vector.shape_cast %2 : vector<1x256x32xf32> to vector<256x32xf32>
    %cst = arith.constant dense<0.000000e+00> : vector<49x32xf32>
    %4 = tpu.matmul %1, %3, %cst {dimension_numbers = #tpu.dot_dimension_numbers<[1], [0], [0], [1], [0, 0, 1, 1], [], []>} : vector<49x256xf32>, vector<256x32xf32>, vector<49x32xf32> -> vector<49x32xf32>
    %c0_5 = arith.constant 0 : index
    %c0_6 = arith.constant 0 : index
    %c0_7 = arith.constant 0 : index
    %5 = vector.load %arg5[%c0_5, %c0_6, %c0_7] : memref<1x49x32xf32, #tpu.memory_space<vmem>>, vector<1x49x32xf32>
    %6 = vector.shape_cast %5 : vector<1x49x32xf32> to vector<49x32xf32>
    %7 = vector.shape_cast %4 : vector<49x32xf32> to vector<1x49x32xf32>
    tpu.vector_store %arg5[%c0_5, %c0_6, %c0_7], %7 {strides = array<i32>} : memref<1x49x32xf32, #tpu.memory_space<vmem>>, vector<1x49x32xf32>,
    return
  }
  func.func @transform_0(%arg0: i32, %arg1: i32, %arg2: memref<3xi32, #tpu.memory_space<smem>>) -> (i32, i32, i32) {
    %c0_i32 = arith.constant 0 : i32
    %c0_i32_0 = arith.constant 0 : i32
    %c0_i32_1 = arith.constant 0 : i32
    return %arg1, %c0_i32, %c0_i32_0 : i32, i32, i32
  }
  func.func @transform_1(%arg0: i32, %arg1: i32, %arg2: memref<3xi32, #tpu.memory_space<smem>>) -> (i32, i32, i32) {
    %0 = arith.index_cast %arg1 : i32 to index
    %1 = memref.load %arg2[%0] : memref<3xi32, #tpu.memory_space<smem>>
    %c0_i32 = arith.constant 0 : i32
    %c0_i32_0 = arith.constant 0 : i32
    return %1, %c0_i32, %arg0 : i32, i32, i32
  }
  func.func @transform_2(%arg0: i32, %arg1: i32, %arg2: memref<3xi32, #tpu.memory_space<smem>>) -> (i32, i32, i32) {
    %c0_i32 = arith.constant 0 : i32
    %c0_i32_0 = arith.constant 0 : i32
    return %arg1, %c0_i32, %arg0 : i32, i32, i32
  }
}

</mosaic_0001>

<bundles_post_ra>
// kernel: tpu_custom_call.1
= control target key start
LH: loop header
LB: loop body
LE: loop exit
PB: predicated region body
PF: predicated region fallthrough
CT: control target
= control target key end

     0   :  { %s757_s0 = inlined_call_operand.vmem [shape: s32[3], index: 0, kind: input, shape index: {}]   ;;  %s758_s1 = inlined_call_operand.vmem [shape: f32[3,49,256], index: 1, kind: input, shape index: {}]   ;;  %s759_s2 = inlined_call_operand.vmem [shape: f32[2,256,32], index: 2, kind: input, shape index: {}]   ;;  %s760_s3 = inlined_call_operand.vmem [shape: f32[3,49,32], index: 3, kind: output, shape index: {}]  }
   0x1   :  { %s8_s14 = sshll.u32 %s757_s0, 4  ;;  %s9_s14 = int_to_ptr.vmem [resolvable:$true] %s8_s14 }
   0x2   :  { %s599_s15 = scalar_lea.vmem %s9_s14, 16  ;;  %p604_p1 = scmp.lt.s32.totalorder %s9_s14, %s9_s14 }
   0x3   :  { %p600_p0 = scmp.ne.s32.totalorder %s9_s14, %s599_s15  ;;  %p605_p2 = scmp.lt.s32.totalorder %s599_s15, %s599_s15 }
   0x5   :  { %p606_p3 = por %p605_p2, %p604_p1 }
   0x7   :  { %p607_p4 = pnand %p606_p3, %p600_p0 }
   0x9   :  { %610 = shalt.err (!%p607_p4)  }
   0xa   :  { %s637_s16 = smov [#allocation3]  }
   0xb   :  { %11 = dma.vmem_to_smem %s9_s14, 16, %s637_s16, [#allocation2] }
   0xc   :  { %623 = dma.done.wait [#allocation2], 16 }
   0xd   :  { %624 = vsyncadd [#allocation2], 4294967280 }
   0xe   :  { %13 = sfence }
   0xf   :  { %s661_s17 = smov 0   ;;  %s663_s18 = smov 0  }
  0x10   :  { %s665_s19 = smov 0  }
  0x11 LB: > { %s28_s0 = sadd.s32 1, %s631_s18  ;;  %p463_p5 = scmp.ge.s32.totalorder %s635_s19, 1  ;;  %s635_s19 = sphi %s665_s19, %s19_s19   ;;  %s631_s18 = sphi %s663_s18, %s762_s18   ;;  %s627_s17 = sphi %s661_s17, %s761_s17  }
  0x12   : > { %p29_p6 = scmp.ge.s32.totalorder %s28_s0, 3  ;;  %p152_p7 = scmp.lt.s32.totalorder %s635_s19, 4 }
  0x14   : > { %s764_s0 = smov (%p29_p6, %s28_s0), 0  ;;  %p153_p8 = pnand %p463_p5, %p152_p7 }
  0x15   : > { %s191_s20 = sld [smem:[#allocation3 + %s627_s17]] (!%p153_p8)  ;;  %p186_p9 = scmp.lt.s32.totalorder (!%p153_p8), %s627_s17, 2  ;;  %vm355_vm0 = vcmask (!%p153_p8), 261120   ;;  %vm362_vm1 = vcmask (!%p153_p8), 253952  }
  0x16   : > { %156 = sbr.rel (%p153_p8) target bundleno = 297 (0x129), region = 28 }
  0x1b   : > { %p192_p10 = scmp.lt.s32.totalorder (!%p153_p8), %s191_s20, 1 }
  0x1d   : > { %s766_s17 = smov (!%p186_p9, %s627_s17), 2  ;;  %s768_s20 = smov (!%p192_p10, %s191_s20), 1 }
  0x1e   : > { %s572_s21 = smul.u32 112, %s766_s17  ;;  %s470_s25 = sshll.u32 %s768_s20, 8 }
  0x1f   : > { %s692_s28 = scalar_lea.vmem %s759_s2, %s470_s25  ;;  %s573_s29 = smul.u32 56, %s766_s17 }
  0x20   : > { %s685_s24 = scalar_lea.vmem %s758_s1, %s572_s21  ;;  %v239_v2 = vld [vmem:[%s692_s28 + $0x80] sm:$0xff]  ;;  %v240_v3 = vld [vmem:[%s692_s28 + $0x88] sm:$0xff]  ;;  %v241_v7 = vld [vmem:[%s692_s28 + $0x90] sm:$0xff] }
  0x21   : > { %v210_v0 = vld [vmem:[%s685_s24 + $0x8] sm:$0xff]  ;;  %v223_v4 = vld [vmem:[%s692_s28] sm:$0xff]  ;;  %v524_v5 = vpack.c.bf16 %v240_v3, %v239_v2  ;;  %v242_v8 = vld [vmem:[%s692_s28 + $0x98] sm:$0xff]  ;;  %s208_s5 = scalar_lea.vmem %s760_s3, %s573_s29 }
  0x22   : > { %v218_v1 = vld [vmem:[%s685_s24 + $0x48] sm:$0xff]  ;;  %319 = vmatprep.mubr.f32.mxu0 %v210_v0  ;;  %v528_v10 = vpack.c.bf16 %v242_v8, %v241_v7  ;;  %v225_v11 = vld [vmem:[%s692_s28 + $0x10] sm:$0xff]  ;;  %v226_v12 = vld [vmem:[%s692_s28 + $0x18] sm:$0xff] }
  0x23   : > { %339 = vmatprep.mubr.f32.mxu1 %v218_v1  ;;  %v224_v6 = vld [vmem:[%s692_s28 + $0x8] sm:$0xff]  ;;  %v243_v13 = vld [vmem:[%s692_s28 + $0xa0] sm:$0xff]  ;;  %525 = vmatprep.subr.bf16.mxu0 %v524_v5  ;;  %v530_v15 = vpack.c.bf16 %v226_v12, %v225_v11  ;;  %v245_v19 = vld [vmem:[%s692_s28 + $0xb0] sm:$0xff] }
  0x24   : > { %v526_v9 = vpack.c.bf16 %v224_v6, %v223_v4  ;;  %556 = vmatprep.subr.bf16.mxu1 %v524_v5  ;;  %v244_v14 = vld [vmem:[%s692_s28 + $0xa8] sm:$0xff]  ;;  %v227_v17 = vld [vmem:[%s692_s28 + $0x20] sm:$0xff]  ;;  %v246_v20 = vld [vmem:[%s692_s28 + $0xb8] sm:$0xff] }
  0x25   : > { %v532_v16 = vpack.c.bf16 %v244_v14, %v243_v13  ;;  %v228_v18 = vld [vmem:[%s692_s28 + $0x28] sm:$0xff]  ;;  %v536_v22 = vpack.c.bf16 %v246_v20, %v245_v19  ;;  %v229_v23 = vld [vmem:[%s692_s28 + $0x30] sm:$0xff]  ;;  %v230_v24 = vld [vmem:[%s692_s28 + $0x38] sm:$0xff] }
  0x26   : > { %527 = vmatpush3.bf16.msra.mxu0 %v526_v9  ;;  %564 = vmatpush3.bf16.msra.mxu1 %v526_v9  ;;  %v534_v21 = vpack.c.bf16 %v228_v18, %v227_v17  ;;  %v247_v25 = vld [vmem:[%s692_s28 + $0xc0] sm:$0xff]  ;;  %v248_v26 = vld [vmem:[%s692_s28 + $0xc8] sm:$0xff]  ;;  %v538_v27 = vpack.c.bf16 %v230_v24, %v229_v23  ;;  %v249_v31 = vld [vmem:[%s692_s28 + $0xd0] sm:$0xff] }
  0x27   : > { %529 = vmatprep.subr.bf16.mxu0 %v528_v10  ;;  %557 = vmatprep.subr.bf16.mxu1 %v528_v10  ;;  %v540_v28 = vpack.c.bf16 %v248_v26, %v247_v25  ;;  %v231_v29 = vld [vmem:[%s692_s28 + $0x40] sm:$0xff]  ;;  %v232_v30 = vld [vmem:[%s692_s28 + $0x48] sm:$0xff]  ;;  %v250_v32 = vld [vmem:[%s692_s28 + $0xd8] sm:$0xff] }
  0x28   : > { %v542_v33 = vpack.c.bf16 %v232_v30, %v231_v29  ;;  %v544_v34 = vpack.c.bf16 %v250_v32, %v249_v31  ;;  %v233_v35 = vld [vmem:[%s692_s28 + $0x50] sm:$0xff]  ;;  %v234_v36 = vld [vmem:[%s692_s28 + $0x58] sm:$0xff]  ;;  %v251_v37 = vld [vmem:[%s692_s28 + $0xe0] sm:$0xff] }
  0x29   : > { %v252_v38 = vld [vmem:[%s692_s28 + $0xe8] sm:$0xff]  ;;  %v546_v39 = vpack.c.bf16 %v234_v36, %v233_v35  ;;  %v235_v41 = vld [vmem:[%s692_s28 + $0x60] sm:$0xff]  ;;  %v253_v43 = vld [vmem:[%s692_s28 + $0xf0] sm:$0xff] }
  0x2a   : > { %531 = vmatpush3.bf16.msra.mxu0 %v530_v15  ;;  %565 = vmatpush3.bf16.msra.mxu1 %v530_v15  ;;  %v548_v40 = vpack.c.bf16 %v252_v38, %v251_v37  ;;  %v236_v42 = vld [vmem:[%s692_s28 + $0x68] sm:$0xff]  ;;  %v254_v44 = vld [vmem:[%s692_s28 + $0xf8] sm:$0xff]  ;;  %v237_v47 = vld [vmem:[%s692_s28 + $0x70] sm:$0xff] }
  0x2b   : > { %533 = vmatprep.subr.bf16.mxu0 %v532_v16  ;;  %558 = vmatprep.subr.bf16.mxu1 %v532_v16  ;;  %v550_v45 = vpack.c.bf16 %v236_v42, %v235_v41  ;;  %v552_v46 = vpack.c.bf16 %v254_v44, %v253_v43  ;;  %v238_v48 = vld [vmem:[%s692_s28 + $0x78] sm:$0xff]  ;;  %v209_v50 = vld [vmem:[%s685_s24] sm:$0xff]  ;;  %v211_v54 = vld [vmem:[%s685_s24 + $0x10] sm:$0xff] }
  0x2c   : > { %v554_v49 = vpack.c.bf16 %v238_v48, %v237_v47  ;;  %v217_v51 = vld [vmem:[%s685_s24 + $0x40] sm:$0xff]  ;;  %v212_v52 = vld [vmem:[%s685_s24 + $0x18] sm:$0xff]  ;;  %v219_v55 = vld [vmem:[%s685_s24 + $0x50] sm:$0xff] }
  0x2d   : > { %v220_v53 = vld [vmem:[%s685_s24 + $0x58] sm:$0xff]  ;;  %v214_v56 = vld [vmem:[%s685_s24 + $0x28] sm:$0xff]  ;;  %v213_v58 = vld [vmem:[%s685_s24 + $0x20] sm:$0xff] }
  0x2e   : > { %535 = vmatpush3.bf16.msra.mxu0 %v534_v21  ;;  %566 = vmatpush3.bf16.msra.mxu1 %v534_v21  ;;  %v222_v57 = vld [vmem:[%s685_s24 + $0x68] sm:$0x1]  ;;  %v221_v59 = vld [vmem:[%s685_s24 + $0x60] sm:$0x1]  ;;  %v216_v60 = vld [vmem:[%s685_s24 + $0x38] sm:$0xff] }
  0x2f   : > { %537 = vmatprep.subr.bf16.mxu0 %v536_v22  ;;  %559 = vmatprep.subr.bf16.mxu1 %v536_v22  ;;  %v215_v61 = vld [vmem:[%s685_s24 + $0x30] sm:$0xff] }
  0x32   : > { %539 = vmatpush3.bf16.msra.mxu0 %v538_v27  ;;  %567 = vmatpush3.bf16.msra.mxu1 %v538_v27 }
  0x33   : > { %541 = vmatprep.subr.bf16.mxu0 %v540_v28  ;;  %560 = vmatprep.subr.bf16.mxu1 %v540_v28 }
  0x36   : > { %543 = vmatpush3.bf16.msra.mxu0 %v542_v33  ;;  %568 = vmatpush3.bf16.msra.mxu1 %v542_v33 }
  0x37   : > { %545 = vmatprep.subr.bf16.mxu0 %v544_v34  ;;  %561 = vmatprep.subr.bf16.mxu1 %v544_v34 }
  0x3a   : > { %547 = vmatpush3.bf16.msra.mxu0 %v546_v39  ;;  %569 = vmatpush3.bf16.msra.mxu1 %v546_v39 }
  0x3b   : > { %549 = vmatprep.subr.bf16.mxu0 %v548_v40  ;;  %562 = vmatprep.subr.bf16.mxu1 %v548_v40 }
  0x3e   : > { %551 = vmatpush3.bf16.msra.mxu0 %v550_v45  ;;  %570 = vmatpush3.bf16.msra.mxu1 %v550_v45 }
  0x3f   : > { %553 = vmatprep.subr.bf16.mxu0 %v552_v46  ;;  %563 = vmatprep.subr.bf16.mxu1 %v552_v46 }
  0x42   : > { %555 = vmatpush3.bf16.msra.mxu0 %v554_v49  ;;  %571 = vmatpush3.bf16.msra.mxu1 %v554_v49 }
  0x45   : > { %320 = vmatmul.mubr.f32.vlgmr.msra.gmra.mrb[0].mxu0 %v209_v50  ;;  %340 = vmatmul.mubr.f32.vlgmr.msra.gmra.mrb[0].mxu1 %v217_v51 }
  0x46   : > { %324 = vmatprep.mubr.f32.mxu0 %v212_v52  ;;  %344 = vmatprep.mubr.f32.mxu1 %v220_v53 }
  0x49   : > { %325 = vmatmul.mubr.f32.gmra.mrb[2].mxu0 %v211_v54  ;;  %345 = vmatmul.mubr.f32.gmra.mrb[2].mxu1 %v219_v55 }
  0x4a   : > { %329 = vmatprep.mubr.f32.mxu0 %v214_v56  ;;  %349 = vmatprep.mubr.f32.mxu1 %v222_v57 }
  0x4d   : > { %330 = vmatmul.mubr.f32.gmra.mrb[4].mxu0 %v213_v58  ;;  %350 = vmatmul.mubr.f32.gmra.mrb[4].mxu1 %v221_v59 }
  0x4e   : > { %334 = vmatprep.mubr.f32.mxu0 %v216_v60 }
  0x51   : > { %335 = vmatmul.mubr.f32.gmra.mrb[6].mxu0 %v215_v61 }
 0x118   : > { %v503_v62 = vpop.f32.mrb[0].mxu0  ;;  %v515_v63 = vpop.f32.mrb[0].mxu1 }
 0x119   : > { %v504_v0 = vpop.f32.mrb[1].mxu0  ;;  %v516_v1 = vpop.f32.mrb[1].mxu1 }
 0x11a   : > { %v505_v2 = vadd.f32 %v504_v0, %v503_v62  ;;  %v517_v3 = vadd.f32 %v516_v1, %v515_v63 }
 0x11c   : > { %356 = vst.msk [vmem:[%s208_s5] sm:$0xff] %vm355_vm0, %v505_v2  ;;  %v506_v4 = vpop.f32.mrb[2].mxu0  ;;  %360 = vst.msk [vmem:[%s208_s5 + $0x20] sm:$0xff] %vm355_vm0, %v517_v3  ;;  %v518_v5 = vpop.f32.mrb[2].mxu1 }
 0x11d   : > { %v507_v6 = vpop.f32.mrb[3].mxu0  ;;  %v519_v7 = vpop.f32.mrb[3].mxu1 }
 0x11e   : > { %v508_v8 = vadd.f32 %v507_v6, %v506_v4  ;;  %v520_v9 = vadd.f32 %v519_v7, %v518_v5 }
 0x120   : > { %357 = vst.msk [vmem:[%s208_s5 + $0x8] sm:$0xff] %vm355_vm0, %v508_v8  ;;  %v509_v10 = vpop.f32.mrb[4].mxu0  ;;  %361 = vst.msk [vmem:[%s208_s5 + $0x28] sm:$0xff] %vm355_vm0, %v520_v9  ;;  %v521_v11 = vpop.f32.mrb[4].mxu1 }
 0x121   : > { %v510_v12 = vpop.f32.mrb[5].mxu0  ;;  %v522_v13 = vpop.f32.mrb[5].mxu1 }
 0x122   : > { %v511_v14 = vadd.f32 %v510_v12, %v509_v10  ;;  %v523_v15 = vadd.f32 %v522_v13, %v521_v11 }
 0x124   : > { %358 = vst.msk [vmem:[%s208_s5 + $0x10] sm:$0xff] %vm355_vm0, %v511_v14  ;;  %v512_v16 = vpop.f32.mrb[6].mxu0 }
 0x125   : > { %363 = vst.msk [vmem:[%s208_s5 + $0x30] sm:$0x1] %vm362_vm1, %v523_v15  ;;  %v513_v17 = vpop.f32.mrb[7].mxu0 }
 0x126   : > { %v514_v18 = vadd.f32 %v513_v17, %v512_v16 }
 0x128   : > { %359 = vst.msk [vmem:[%s208_s5 + $0x18] sm:$0xff] %vm355_vm0, %v514_v18 }
 0x129 PF: > { %s19_s19 = sadd.s32 1, %s635_s19   ;;  %s761_s17 = smov %s631_s18 }
 0x12a   : > { %p16_p11 = scmp.ge.s32.totalorder %s19_s19, 5   ;;  %s762_s18 = smov %s764_s0 }
 0x12c   :  { %18 = sbr.rel (!%p16_p11) target bundleno = 17 (0x11), region = 61 }

</bundles_post_ra>
